<compile_context>
chip_gen: v7x
topology: tpu7x:2x2x1
jax: 0.10.0
libtpu: 0.0.40
codegen_flags: <defaults>
</compile_context>

<pallas_src>
import functools

import jax
import jax.numpy as jnp
from jax.experimental import pallas as pl
from jax.experimental.pallas import tpu as pltpu

LN_EPS = 1e-12


# ------------------------------- fused kernel --------------------------------
def bert_output_kernel(h_ref, x_ref, w_ref, b_ref, g_ref, beta_ref, o_ref):
    # h_ref: (TM, I) f32 activations, x_ref: (TM, H) f32 residual input
    # w_ref: (I, H) bf16 weight, b/g/beta: (1, H) f32
    h = h_ref[...]
    # bf16 operands, f32 accumulation on the MXU
    y = jnp.dot(h.astype(jnp.bfloat16), w_ref[...],
                preferred_element_type=jnp.float32) + b_ref[...]
    # TODO(synk): nn.Dropout(hidden_dropout_prob) is eval-mode identity here.
    z = y + x_ref[...]                                   # residual add (f32)
    # TF-style LayerNorm (biased variance, eps inside sqrt), rsqrt -> EUP slot
    u = jnp.mean(z, axis=-1, keepdims=True)
    s = jnp.mean((z - u) * (z - u), axis=-1, keepdims=True)
    zn = (z - u) * jax.lax.rsqrt(s + LN_EPS)
    o_ref[...] = g_ref[...] * zn + beta_ref[...]


def _pick_row_tile(m, max_tile=512):
    """Largest row tile <= max_tile that is a multiple of 8 and divides m."""
    if m <= max_tile:
        return m
    for tm in range(max_tile - (max_tile % 8), 7, -8):
        if m % tm == 0:
            return tm
    return m


def bert_output(hidden_states, input_tensor, params):
    """hidden_states: (B, S, I) f32; input_tensor: (B, S, H) f32 -> (B, S, H) f32."""
    B, S, I = hidden_states.shape
    H = input_tensor.shape[-1]
    M = B * S

    # Flatten (B, S) -> rows so one grid step processes many tokens at once.
    h2 = hidden_states.reshape(M, I)
    x2 = input_tensor.reshape(M, H)

    TM = _pick_row_tile(M)
    grid = (M // TM,)

    wmap = lambda i: (0, 0)
    out2 = pl.pallas_call(
        bert_output_kernel,
        out_shape=jax.ShapeDtypeStruct((M, H), jnp.float32),
        grid=grid,
        in_specs=[
            pl.BlockSpec((TM, I), lambda i: (i, 0)),     # hidden_states rows
            pl.BlockSpec((TM, H), lambda i: (i, 0)),     # residual rows
            pl.BlockSpec((I, H), wmap),                  # dense weight (bf16)
            pl.BlockSpec((1, H), wmap),                  # dense bias
            pl.BlockSpec((1, H), wmap),                  # LayerNorm gamma
            pl.BlockSpec((1, H), wmap),                  # LayerNorm beta
        ],
        out_specs=pl.BlockSpec((TM, H), lambda i: (i, 0)),
        compiler_params=pltpu.CompilerParams(dimension_semantics=("parallel",)),
    )(h2, x2, params["w"], params["b"], params["gamma"], params["beta"])

    return out2.reshape(B, S, H)


# ---------------------------- parameters & reference --------------------------
def make_params(key, *, intermediate, hidden):
    kw, = jax.random.split(key, 1)
    w = (0.02 * jax.random.normal(kw, (intermediate, hidden))).astype(jnp.float32)
    return {
        "w": w.astype(jnp.bfloat16),                     # bf16 MXU operand (halves DMA)
        "b": jnp.zeros((1, hidden), jnp.float32),
        "gamma": jnp.ones((1, hidden), jnp.float32),
        "beta": jnp.zeros((1, hidden), jnp.float32),
    }


def bert_output_ref(hidden_states, input_tensor, params):
    """Pure-JAX reference with the same bf16-operand / f32-accumulate matmul."""
    y = jnp.dot(hidden_states.astype(jnp.bfloat16), params["w"],
                preferred_element_type=jnp.float32) + params["b"][0]
    z = y + input_tensor
    u = jnp.mean(z, axis=-1, keepdims=True)
    s = jnp.mean((z - u) ** 2, axis=-1, keepdims=True)
    zn = (z - u) / jnp.sqrt(s + LN_EPS)
    return params["gamma"][0] * zn + params["beta"][0]


# ------------------------------------ main ------------------------------------
if __name__ == "__main__":
    # Small config consistent with the module: batch=2, seq=16,
    # intermediate_size=64, hidden_size=32.
    B, SEQ, INTER, HIDDEN = 2, 16, 64, 32

    key = jax.random.PRNGKey(0)
    k_h, k_x, k_p = jax.random.split(key, 3)
    hidden_states = jax.random.normal(k_h, (B, SEQ, INTER), jnp.float32)
    input_tensor = jax.random.normal(k_x, (B, SEQ, HIDDEN), jnp.float32)

    params = make_params(k_p, intermediate=INTER, hidden=HIDDEN)

    out = bert_output(hidden_states, input_tensor, params)
    out = jax.block_until_ready(out)

    assert out.shape == (B, SEQ, HIDDEN) and out.dtype == jnp.float32
    ref = bert_output_ref(hidden_states, input_tensor, params)
    assert jnp.allclose(out, ref, atol=1e-3, rtol=1e-3), "mismatch vs reference"

    print("KERNEL_OK")
</pallas_src>

<mosaic_0001>
module attributes {stable_mosaic.version = 11 : i64} {
  func.func @bert_output_kernel(%arg0: i32, %arg1: memref<32x64xf32, #tpu.memory_space<vmem>>, %arg2: memref<32x32xf32, #tpu.memory_space<vmem>>, %arg3: memref<64x32xbf16, #tpu.memory_space<vmem>>, %arg4: memref<1x32xf32, #tpu.memory_space<vmem>>, %arg5: memref<1x32xf32, #tpu.memory_space<vmem>>, %arg6: memref<1x32xf32, #tpu.memory_space<vmem>>, %arg7: memref<32x32xf32, #tpu.memory_space<vmem>>) attributes {dimension_semantics = [#tpu.dimension_semantics<parallel>], iteration_bounds = array<i64: 1>, scalar_prefetch = 0 : i64, scratch_operands = 0 : i64, tpu.core_type = #tpu.core_type<tc>, window_params = [{transform_indices = @transform_0, window_bounds = array<i64: 32, 64>}, {transform_indices = @transform_1, window_bounds = array<i64: 32, 32>}, {pipeline_mode = #tpu.pipeline_mode<synchronous>, transform_indices = @transform_2, window_bounds = array<i64: 64, 32>}, {pipeline_mode = #tpu.pipeline_mode<synchronous>, transform_indices = @transform_3, window_bounds = array<i64: 1, 32>}, {pipeline_mode = #tpu.pipeline_mode<synchronous>, transform_indices = @transform_4, window_bounds = array<i64: 1, 32>}, {pipeline_mode = #tpu.pipeline_mode<synchronous>, transform_indices = @transform_5, window_bounds = array<i64: 1, 32>}, {transform_indices = @transform_6, window_bounds = array<i64: 32, 32>}]} {
    %c0 = arith.constant 0 : index
    %c0_0 = arith.constant 0 : index
    %0 = vector.load %arg1[%c0, %c0_0] : memref<32x64xf32, #tpu.memory_space<vmem>>, vector<32x64xf32>
    %1 = arith.truncf %0 : vector<32x64xf32> to vector<32x64xbf16>
    %c0_1 = arith.constant 0 : index
    %c0_2 = arith.constant 0 : index
    %2 = vector.load %arg3[%c0_1, %c0_2] : memref<64x32xbf16, #tpu.memory_space<vmem>>, vector<64x32xbf16>
    %cst = arith.constant dense<0.000000e+00> : vector<32x32xf32>
    %3 = tpu.matmul %1, %2, %cst {dimension_numbers = #tpu.dot_dimension_numbers<[1], [0], [0], [1], [0, 0, 1, 1], [], []>} : vector<32x64xbf16>, vector<64x32xbf16>, vector<32x32xf32> -> vector<32x32xf32>
    %c0_3 = arith.constant 0 : index
    %c0_4 = arith.constant 0 : index
    %4 = vector.load %arg4[%c0_3, %c0_4] : memref<1x32xf32, #tpu.memory_space<vmem>>, vector<1x32xf32>
    %5 = vector.broadcast %4 : vector<1x32xf32> to vector<32x32xf32>
    %6 = arith.addf %3, %5 : vector<32x32xf32>
    %c0_5 = arith.constant 0 : index
    %c0_6 = arith.constant 0 : index
    %7 = vector.load %arg2[%c0_5, %c0_6] : memref<32x32xf32, #tpu.memory_space<vmem>>, vector<32x32xf32>
    %8 = arith.addf %6, %7 : vector<32x32xf32>
    %cst_7 = arith.constant dense<0.000000e+00> : vector<32xf32>
    %9 = vector.multi_reduction <add>, %8, %cst_7 [1] : vector<32x32xf32> to vector<32xf32>
    %10 = vector.shape_cast %9 : vector<32xf32> to vector<32x1xf32>
    %cst_8 = arith.constant 3.200000e+01 : f32
    %11 = vector.broadcast %cst_8 : f32 to vector<32x1xf32>
    %12 = arith.divf %10, %11 : vector<32x1xf32>
    %13 = vector.broadcast %12 : vector<32x1xf32> to vector<32x32xf32>
    %14 = arith.subf %8, %13 : vector<32x32xf32>
    %15 = vector.broadcast %12 : vector<32x1xf32> to vector<32x32xf32>
    %16 = arith.subf %8, %15 : vector<32x32xf32>
    %17 = arith.mulf %14, %16 : vector<32x32xf32>
    %cst_9 = arith.constant dense<0.000000e+00> : vector<32xf32>
    %18 = vector.multi_reduction <add>, %17, %cst_9 [1] : vector<32x32xf32> to vector<32xf32>
    %19 = vector.shape_cast %18 : vector<32xf32> to vector<32x1xf32>
    %cst_10 = arith.constant 3.200000e+01 : f32
    %20 = vector.broadcast %cst_10 : f32 to vector<32x1xf32>
    %21 = arith.divf %19, %20 : vector<32x1xf32>
    %22 = vector.broadcast %12 : vector<32x1xf32> to vector<32x32xf32>
    %23 = arith.subf %8, %22 : vector<32x32xf32>
    %cst_11 = arith.constant 9.99999996E-13 : f32
    %24 = vector.broadcast %cst_11 : f32 to vector<32x1xf32>
    %25 = arith.addf %21, %24 : vector<32x1xf32>
    %26 = math.rsqrt %25 : vector<32x1xf32>
    %27 = vector.broadcast %26 : vector<32x1xf32> to vector<32x32xf32>
    %28 = arith.mulf %23, %27 : vector<32x32xf32>
    %c0_12 = arith.constant 0 : index
    %c0_13 = arith.constant 0 : index
    %29 = vector.load %arg5[%c0_12, %c0_13] : memref<1x32xf32, #tpu.memory_space<vmem>>, vector<1x32xf32>
    %30 = vector.broadcast %29 : vector<1x32xf32> to vector<32x32xf32>
    %31 = arith.mulf %30, %28 : vector<32x32xf32>
    %c0_14 = arith.constant 0 : index
    %c0_15 = arith.constant 0 : index
    %32 = vector.load %arg6[%c0_14, %c0_15] : memref<1x32xf32, #tpu.memory_space<vmem>>, vector<1x32xf32>
    %33 = vector.broadcast %32 : vector<1x32xf32> to vector<32x32xf32>
    %34 = arith.addf %31, %33 : vector<32x32xf32>
    %c0_16 = arith.constant 0 : index
    %c0_17 = arith.constant 0 : index
    %35 = vector.load %arg7[%c0_16, %c0_17] : memref<32x32xf32, #tpu.memory_space<vmem>>, vector<32x32xf32>
    tpu.vector_store %arg7[%c0_16, %c0_17], %34 {strides = array<i32>} : memref<32x32xf32, #tpu.memory_space<vmem>>, vector<32x32xf32>,
    return
  }
  func.func @transform_0(%arg0: i32) -> (i32, i32) {
    %c0_i32 = arith.constant 0 : i32
    %c0_i32_0 = arith.constant 0 : i32
    return %arg0, %c0_i32 : i32, i32
  }
  func.func @transform_1(%arg0: i32) -> (i32, i32) {
    %c0_i32 = arith.constant 0 : i32
    %c0_i32_0 = arith.constant 0 : i32
    return %arg0, %c0_i32 : i32, i32
  }
  func.func @transform_2(%arg0: i32) -> (i32, i32) {
    %c0_i32 = arith.constant 0 : i32
    %c0_i32_0 = arith.constant 0 : i32
    %c0_i32_1 = arith.constant 0 : i32
    return %c0_i32, %c0_i32_0 : i32, i32
  }
  func.func @transform_3(%arg0: i32) -> (i32, i32) {
    %c0_i32 = arith.constant 0 : i32
    %c0_i32_0 = arith.constant 0 : i32
    %c0_i32_1 = arith.constant 0 : i32
    return %c0_i32, %c0_i32_0 : i32, i32
  }
  func.func @transform_4(%arg0: i32) -> (i32, i32) {
    %c0_i32 = arith.constant 0 : i32
    %c0_i32_0 = arith.constant 0 : i32
    %c0_i32_1 = arith.constant 0 : i32
    return %c0_i32, %c0_i32_0 : i32, i32
  }
  func.func @transform_5(%arg0: i32) -> (i32, i32) {
    %c0_i32 = arith.constant 0 : i32
    %c0_i32_0 = arith.constant 0 : i32
    %c0_i32_1 = arith.constant 0 : i32
    return %c0_i32, %c0_i32_0 : i32, i32
  }
  func.func @transform_6(%arg0: i32) -> (i32, i32) {
    %c0_i32 = arith.constant 0 : i32
    %c0_i32_0 = arith.constant 0 : i32
    return %arg0, %c0_i32 : i32, i32
  }
}

</mosaic_0001>

<bundles_post_ra>
// kernel: tpu_custom_call.1
= control target key start
LH: loop header
LB: loop body
LE: loop exit
PB: predicated region body
PF: predicated region fallthrough
CT: control target
= control target key end

     0   :  { %11 = vsyncpa [#allocation3], 0  ;;  %s450_s0 = inlined_call_operand.vmem [shape: f32[32,64], index: 0, kind: input, shape index: {}]   ;;  %s451_s1 = inlined_call_operand.hbm [shape: f32[32,32], index: 1, kind: input, shape index: {}]   ;;  %s452_s2 = inlined_call_operand.vmem [shape: bf16[64,32], index: 2, kind: input, shape index: {}]   ;;  %s453_s3 = inlined_call_operand.vmem [shape: f32[1,32], index: 3, kind: input, shape index: {}]   ;;  %s454_s4 = inlined_call_operand.vmem [shape: f32[1,32], index: 4, kind: input, shape index: {}]   ;;  %s455_s5 = inlined_call_operand.vmem [shape: f32[1,32], index: 5, kind: input, shape index: {}]   ;;  %s456_s6 = inlined_call_operand.hbm [shape: f32[32,32], index: 6, kind: output, shape index: {}]  }
   0x1   :  { %12 = vsyncpa [#allocation4], 0  ;;  %s336_s21 = smov [#allocation2]   ;;  %s288_s25 = scalar_lea.hbm %s451_s1, 512 }
   0x2   :  { %s20_s22 = sshll.u32 %s336_s21, 4  ;;  %p289_p0 = scmp.ne.s32.totalorder %s451_s1, %s288_s25  ;;  %s21_s22 = int_to_ptr.vmem [resolvable:$true] %s20_s22 }
   0x3   :  { %p292_p1 = scmp.lt.u32.totalorder %s288_s25, %s451_s1 }
   0x5   :  { %p294_p2 = pnand %p292_p1, %p289_p0 }
   0x7   :  { %297 = shalt.err (!%p294_p2)
}
   0x8   :  { %s298_s30 = scalar_lea.vmem %s21_s22, 512  ;;  %p303_p4 = scmp.lt.s32.totalorder %s21_s22, %s21_s22 }
   0x9   :  { %p299_p3 = scmp.ne.s32.totalorder %s21_s22, %s298_s30  ;;  %p304_p5 = scmp.lt.s32.totalorder %s298_s30, %s298_s30 }
   0xb   :  { %p305_p6 = por %p304_p5, %p303_p4 }
   0xd   :  { %p306_p7 = pnand %p305_p6, %p299_p3 }
   0xf   :  { %309 = shalt.err (!%p306_p7)
}
  0x10   :  { %s337_s7 = smov 128   ;;  %s338_s8 = smov 8  }
  0x11   :  { %26 = dma.hbm_to_vmem [thread:$0]  %s451_s1, 512, %s21_s22, [#allocation3], %s337_s7, %s337_s7, %s338_s8  }
  0x12   :  { %332 = dma.done.wait [#allocation3], 512  }
  0x13   :  { %333 = vsyncadd [#allocation3], 4294966784  ;;  %v276_v0 = vld [vmem:[%s452_s2] sm:$0xff]   ;;  %v277_v1 = vld [vmem:[%s452_s2 + $0x8] sm:$0xff]   ;;  %vm84_vm0 = vcmask 523264   ;;  %vm148_vm1 = vcmask 261120  }
  0x14   :  { %260 = vmatprep.subr.bf16.mxu0 %v276_v0  ;;  %v278_v2 = vld [vmem:[%s452_s2 + $0x10] sm:$0xff]   ;;  %v39_v3 = vld [vmem:[%s450_s0] sm:$0xff]  ;;  %v40_v4 = vld [vmem:[%s450_s0 + $0x8] sm:$0xff] }
  0x15   :  { %261 = vmatpush3.bf16.msra.mxu0 %v276_v0  ;;  %v43_v5 = vpack.c.bf16 %v40_v4, %v39_v3  ;;  %v279_v6 = vld [vmem:[%s452_s2 + $0x18] sm:$0xff]   ;;  %v41_v7 = vld [vmem:[%s450_s0 + $0x10] sm:$0xff]  ;;  %v245_v10 = vld [vmem:[%s453_s3] ss:$0 sm:$0xff] }
  0x16   :  { %262 = vmatprep.subr.bf16.mxu0 %v277_v1  ;;  %v42_v8 = vld [vmem:[%s450_s0 + $0x18] sm:$0xff]  ;;  %v142_v12 = vld [vmem:[#allocation2 + $0x10] sm:$0xff]  ;;  %v140_v15 = vld [vmem:[#allocation2] sm:$0xff] }
  0x17   :  { %268 = vmatprep.mubr.msk.bf16.mxu0 %vm84_vm0, %v43_v5  ;;  %v44_v9 = vpack.c.bf16 %v42_v8, %v41_v7  ;;  %v143_v18 = vld [vmem:[#allocation2 + $0x18] sm:$0xff]  ;;  %v141_v22 = vld [vmem:[#allocation2 + $0x8] sm:$0xff]  ;;  %v252_v0 = vld [vmem:[%s454_s4] ss:$0 sm:$0xff]  ;;  %s339_s4 = smov [#allocation5]  }
  0x18   :  { %s233_s29 = sshll.u32 %s339_s4, 4  ;;  %s234_s29 = int_to_ptr.vmem [resolvable:$true] %s233_s29 }
  0x19   :  { %263 = vmatpush3.bf16.msra.mxu0 %v277_v1  ;;  %p315_p9 = scmp.lt.s32.totalorder %s234_s29, %s234_s29 }
  0x1a   :  { %264 = vmatprep.subr.bf16.mxu0 %v278_v2 }
  0x1d   :  { %265 = vmatpush3.bf16.msra.mxu0 %v278_v2  ;;  %v253_v2 = vld [vmem:[%s455_s5] ss:$0 sm:$0xff]  ;;  %s310_s5 = scalar_lea.vmem %s234_s29, 512 }
  0x1e   :  { %266 = vmatprep.subr.bf16.mxu0 %v279_v6  ;;  %p311_p8 = scmp.ne.s32.totalorder %s234_s29, %s310_s5  ;;  %p316_p10 = scmp.lt.s32.totalorder %s310_s5, %s310_s5 }
  0x20   :  { %p317_p11 = por %p316_p10, %p315_p9 }
  0x21   :  { %267 = vmatpush3.bf16.msra.mxu0 %v279_v6 }
  0x22   :  { %p318_p12 = pnand %p317_p11, %p311_p8 }
  0x24   :  { %269 = vmatmul.mubr.msk.bf16.vlgmr.msra.gmra.mrb[0].mxu0 %vm84_vm0, %v44_v9 }
  0xf7   :  { %v270_v11 = vpop.f32.mrb[0].mxu0 }
  0xf8   :  { %v134_v13 = vadd.f32 %v270_v11, %v245_v10  ;;  %v125_v14 = vpop.f32.mrb[1].mxu0 }
  0xf9   :  { %v126_v16 = vadd.f32 %v245_v10, %v125_v14  ;;  %v271_v17 = vpop.f32.mrb[2].mxu0 }
  0xfa   :  { %v137_v19 = vadd.f32 %v271_v17, %v245_v10  ;;  %v128_v20 = vpop.f32.mrb[3].mxu0  ;;  %v146_v21 = vadd.f32 %v142_v12, %v134_v13 }
  0xfb   :  { %v129_v23 = vadd.f32 %v245_v10, %v128_v20  ;;  %v144_v24 = vadd.f32 %v140_v15, %v126_v16 }
  0xfc   :  { %v155_v25 = vsel %vm148_vm1, %v146_v21, 0.0  ;;  %v147_v26 = vadd.f32 %v143_v18, %v137_v19 }
  0xfd   :  { %156 = vadd.xlane.f32.xlu1 %v155_v25  ;;  %v149_v27 = vsel %vm148_vm1, %v144_v24, 0.0  ;;  %v145_v28 = vadd.f32 %v141_v22, %v129_v23 }
  0xfe   :  { %150 = vadd.xlane.f32.xlu0 %v149_v27  ;;  %v158_v29 = vsel %vm148_vm1, %v147_v26, 0.0 }
  0xff   :  { %v152_v30 = vsel %vm148_vm1, %v145_v28, 0.0 }
 0x101   :  { %159 = vadd.xlane.f32.xlu1 %v158_v29 }
 0x102   :  { %153 = vadd.xlane.f32.xlu0 %v152_v30 }
 0x18a   :  { %v157_v31 = vpop.xlane.xlu1 %156 }
 0x18b   :  { %v164_v32 = vmul.f32 0.03125, %v157_v31  ;;  %v151_v33 = vpop.xlane.xlu0 %150 }
 0x18c   :  { %v162_v34 = vmul.f32 0.03125, %v151_v33 }
 0x18d   :  { %v168_v35 = vsub.f32 %v146_v21, %v164_v32 }
 0x18e   :  { %v166_v36 = vsub.f32 %v144_v24, %v162_v34  ;;  %v160_v37 = vpop.xlane.xlu1 %159 }
 0x18f   :  { %v165_v38 = vmul.f32 0.03125, %v160_v37  ;;  %v154_v39 = vpop.xlane.xlu0 %153  ;;  %v172_v45 = vmul.f32 %v168_v35, %v168_v35 }
 0x190   :  { %v163_v40 = vmul.f32 0.03125, %v154_v39  ;;  %v170_v41 = vmul.f32 %v166_v36, %v166_v36 }
 0x191   :  { %v169_v42 = vsub.f32 %v147_v26, %v165_v38  ;;  %v180_v47 = vsel %vm148_vm1, %v172_v45, 0.0 }
 0x192   :  { %v167_v43 = vsub.f32 %v145_v28, %v163_v40  ;;  %v174_v44 = vsel %vm148_vm1, %v170_v41, 0.0 }
 0x193   :  { %175 = vadd.xlane.f32.xlu0 %v174_v44  ;;  %v173_v49 = vmul.f32 %v169_v42, %v169_v42 }
 0x194   :  { %v171_v46 = vmul.f32 %v167_v43, %v167_v43 }
 0x195   :  { %v183_v50 = vsel %vm148_vm1, %v173_v49, 0.0 }
 0x196   :  { %v177_v48 = vsel %vm148_vm1, %v171_v46, 0.0 }
 0x197   :  { %181 = vadd.xlane.f32.xlu0 %v180_v47  ;;  %178 = vadd.xlane.f32.xlu1 %v177_v48 }
 0x19b   :  { %184 = vadd.xlane.f32.xlu1 %v183_v50 }
 0x220   :  { %v176_v51 = vpop.xlane.xlu0 %175 }
 0x221   :  { %v186_v52 = vmul.f32 0.03125, %v176_v51 }
 0x223   :  { %v190_v53 = vadd.f32 1e-12, %v186_v52 }
 0x224   :  { %v179_v54 = vpop.xlane.xlu1 %178  ;;  %v182_v55 = vpop.xlane.xlu0 %181 }
 0x225   :  { %280 = vrsqrt.f32 %v190_v53  ;;  %v187_v56 = vmul.f32 0.03125, %v179_v54  ;;  %v188_v57 = vmul.f32 0.03125, %v182_v55 }
 0x227   :  { %v191_v58 = vadd.f32 1e-12, %v187_v56  ;;  %v192_v59 = vadd.f32 1e-12, %v188_v57 }
 0x228   :  { %v185_v60 = vpop.xlane.xlu1 %184 }
 0x229   :  { %282 = vrsqrt.f32 %v191_v58  ;;  %v189_v61 = vmul.f32 0.03125, %v185_v60 }
 0x22a   :  { %284 = vrsqrt.f32 %v192_v59 }
 0x22b   :  { %v193_v62 = vadd.f32 1e-12, %v189_v61 }
 0x22d   :  { %286 = vrsqrt.f32 %v193_v62 }
 0x22f   :  { %v281_v63 = vpop.eup %280 }
 0x230   :  { %v198_v1 = vmul.f32 %v281_v63, %v166_v36 }
 0x232   :  { %v209_v3 = vmul.f32 %v252_v0, %v198_v1 }
 0x233   :  { %v283_v4 = vpop.eup %282 }
 0x234   :  { %v285_v5 = vpop.eup %284  ;;  %v199_v6 = vmul.f32 %v283_v4, %v167_v43  ;;  %v220_v7 = vadd.f32 %v253_v2, %v209_v3 }
 0x235   :  { %v200_v8 = vmul.f32 %v285_v5, %v168_v35 }
 0x236   :  { %v210_v9 = vmul.f32 %v252_v0, %v199_v6  ;;  %224 = vst.msk [vmem:[#allocation5] sm:$0xff] %vm148_vm1, %v220_v7 }
 0x237   :  { %v287_v10 = vpop.eup %286  ;;  %v211_v11 = vmul.f32 %v252_v0, %v200_v8 }
 0x238   :  { %v201_v12 = vmul.f32 %v287_v10, %v169_v42  ;;  %v221_v13 = vadd.f32 %v253_v2, %v210_v9 }
 0x239   :  { %v222_v14 = vadd.f32 %v253_v2, %v211_v11 }
 0x23a   :  { %v212_v15 = vmul.f32 %v252_v0, %v201_v12  ;;  %225 = vst.msk [vmem:[#allocation5 + $0x8] sm:$0xff] %vm148_vm1, %v221_v13 }
 0x23b   :  { %226 = vst.msk [vmem:[#allocation5 + $0x10] sm:$0xff] %vm148_vm1, %v222_v14 }
 0x23c   :  { %v223_v16 = vadd.f32 %v253_v2, %v212_v15 }
 0x23e   :  { %227 = vst.msk [vmem:[#allocation5 + $0x18] sm:$0xff] %vm148_vm1, %v223_v16 }
 0x23f   :  { %321 = shalt.err (!%p318_p12)
}
 0x240   :  { %s322_s10 = scalar_lea.hbm %s456_s6, 512 }
 0x241   :  { %p323_p13 = scmp.ne.s32.totalorder %s456_s6, %s322_s10  ;;  %p326_p0 = scmp.lt.u32.totalorder %s322_s10, %s456_s6 }
 0x243   :  { %p328_p1 = pnand %p326_p0, %p323_p13 }
 0x245   :  { %331 = shalt.err (!%p328_p1)
}
 0x246   :  { %239 = dma.vmem_to_hbm [thread:$0]  %s234_s29, 512, %s456_s6, [#allocation4], %s337_s7, %s337_s7, %s338_s8  }
 0x247   :  { %334 = dma.done.wait [#allocation4], 512  }
 0x248   :  { %335 = vsyncadd [#allocation4], 4294966784 }
 0x249   :  { %243 = vsyncpa [#allocation3], 1 }
 0x24a   :  { %244 = vsyncpa [#allocation4], 1 }

</bundles_post_ra>
